<compile_context>
chip_gen: v7x
topology: tpu7x:2x2x1
jax: 0.10.0
libtpu: 0.0.40
codegen_flags: <defaults>
</compile_context>

<pallas_src>
import math

import jax
import jax.numpy as jnp
from jax.experimental import pallas as pl
from jax.experimental.pallas import tpu as pltpu


def _round_up(x, m):
    return (x + m - 1) // m * m


def _mha_kernel(q_ref, kt_ref, v_ref, mask_ref,
                wq_ref, bq_ref, wo_ref, bo_ref, out_ref):
    n_head, d_k, _ = wo_ref.shape

    q_in = q_ref[0]                                   # (tq, F_pad) bf16
    mask_row = mask_ref[0].astype(jnp.float32)        # (1 | tq, T2_pad)
    rev = (mask_row - 1.0) * 1000.0                   # hoisted, reused by all heads

    # Full-width Q projection for all heads at once (MXU N = F_pad);
    # 1/sqrt(d_k) already folded into wq/bq.  Single bf16 cast reused below.
    q_all = (jnp.dot(q_in, wq_ref[...], preferred_element_type=jnp.float32)
             + bq_ref[...]).astype(jnp.bfloat16)      # (tq, F_pad)

    x_acc = None
    for h in range(n_head):                           # static unroll over heads
        q_h = q_all[:, h * d_k:(h + 1) * d_k]         # (tq, d_k) static lane slice

        # scores = q_h @ k_h^T — K arrives pre-transposed, so this is an NN dot.
        s = jnp.dot(q_h, kt_ref[h], preferred_element_type=jnp.float32)  # (tq, T2p)

        # Masking exactly as the PyTorch module; softmax in f32.
        s = s * mask_row + rev
        m = jnp.max(s, axis=-1, keepdims=True)
        e = jnp.exp(s - m)
        p = e * pl.reciprocal(jnp.sum(e, axis=-1, keepdims=True), approx=True)
        attn = (p * mask_row).astype(jnp.bfloat16)
        # TODO(synk): dropout is identity here (eval mode); training-mode
        # dropout would need pltpu.prng_random_bits.

        ctx = jnp.dot(attn, v_ref[h], preferred_element_type=jnp.float32)  # (tq, d_k)
        # Per-head slice of the output projection, accumulated (no concat).
        contrib = jnp.dot(ctx.astype(jnp.bfloat16), wo_ref[h],
                          preferred_element_type=jnp.float32)              # (tq, F_pad)
        x_acc = contrib if x_acc is None else x_acc + contrib

    out_ref[0] = (x_acc + bo_ref[...]).astype(out_ref.dtype)


def multi_headed_attention(query, key, value, mask, params, n_head, *, tq=256,
                           kv_same=None, vmem_limit_bytes=48 * 1024 * 1024):
    """Pallas forward pass matching MultiHeadedAttention.forward (eval mode)."""
    B, T1, F = query.shape
    T2 = key.shape[1]
    assert F % n_head == 0
    d_k = F // n_head
    out_dtype = query.dtype
    if kv_same is None:
        kv_same = key is value

    wq, bq, wkv, bkv, wo, bo = params
    scale = 1.0 / math.sqrt(d_k)

    # Lane/sublane-friendly padded sizes.
    F_pad = _round_up(F, 128)
    T2_pad = _round_up(T2, 128)
    tq = _round_up(min(tq, _round_up(T1, 8)), 8)
    T1_pad = _round_up(T1, tq)

    # ---- K/V projections hoisted out of the kernel: one lane-dense matmul
    # each per call (previously recomputed per query tile and per head).
    k_proj = key.astype(jnp.float32) @ wkv.T + bkv                     # (B, T2, F)
    if kv_same:
        v_proj = k_proj          # shared linear_kv: project once, reuse
    else:
        v_proj = value.astype(jnp.float32) @ wkv.T + bkv

    # K laid out per head as (d_k, T2) so the in-kernel scores dot is NN.
    kt = k_proj.reshape(B, T2, n_head, d_k).transpose(0, 2, 3, 1)      # (B,H,d_k,T2)
    kt = jnp.pad(kt, ((0, 0), (0, 0), (0, 0), (0, T2_pad - T2)))
    kt_p = kt.reshape(B * n_head, d_k, T2_pad).astype(jnp.bfloat16)
    vh = v_proj.reshape(B, T2, n_head, d_k).transpose(0, 2, 1, 3)      # (B,H,T2,d_k)
    vh = jnp.pad(vh, ((0, 0), (0, 0), (0, T2_pad - T2), (0, 0)))
    v_p = vh.reshape(B * n_head, T2_pad, d_k).astype(jnp.bfloat16)

    # Q / output projection weights (nn.Linear weight is (out, in));
    # 1/sqrt(d_k) folded into the query projection.  MXU operands bf16.
    wq_all = jnp.pad((wq * scale).T,
                     ((0, F_pad - F), (0, F_pad - F))).astype(jnp.bfloat16)
    bq_all = jnp.pad((bq * scale).reshape(1, F),
                     ((0, 0), (0, F_pad - F))).astype(jnp.float32)
    wo_h = jnp.pad(wo.T.reshape(n_head, d_k, F),
                   ((0, 0), (0, 0), (0, F_pad - F))).astype(jnp.bfloat16)
    bo_p = jnp.pad(bo.reshape(1, F), ((0, 0), (0, F_pad - F))).astype(jnp.float32)

    # Padded, bf16 query activations (lane-dense last dim).
    q_p = jnp.pad(query, ((0, 0), (0, T1_pad - T1),
                          (0, F_pad - F))).astype(jnp.bfloat16)

    # Mask: (B,1,T2) or (B,T1,T2); None means attend to every (real) key.
    # Padded key columns are neutralized with mask=0 (exactly the reference
    # soft-mask + post-softmax zeroing path).  Shipped narrow (bf16, 0/1 exact).
    if mask is None:
        mask_f = jnp.ones((B, 1, T2), jnp.float32)
    else:
        mask_f = mask.astype(jnp.float32)
    per_query_mask = mask_f.shape[1] != 1
    if per_query_mask:
        mask_p = jnp.pad(mask_f, ((0, 0), (0, T1_pad - T1), (0, T2_pad - T2)))
        mask_spec = pl.BlockSpec((1, tq, T2_pad), lambda b, qi: (b, qi, 0))
    else:
        mask_p = jnp.pad(mask_f, ((0, 0), (0, 0), (0, T2_pad - T2)))
        mask_spec = pl.BlockSpec((1, 1, T2_pad), lambda b, qi: (b, 0, 0))
    mask_p = mask_p.astype(jnp.bfloat16)

    in_specs = [
        pl.BlockSpec((1, tq, F_pad), lambda b, qi: (b, qi, 0)),        # query tile
        pl.BlockSpec((n_head, d_k, T2_pad), lambda b, qi: (b, 0, 0)),  # K^T (resident per b)
        pl.BlockSpec((n_head, T2_pad, d_k), lambda b, qi: (b, 0, 0)),  # V   (resident per b)
        mask_spec,
        pl.BlockSpec((F_pad, F_pad), lambda b, qi: (0, 0)),            # wq (all heads)
        pl.BlockSpec((1, F_pad), lambda b, qi: (0, 0)),                # bq
        pl.BlockSpec((n_head, d_k, F_pad), lambda b, qi: (0, 0, 0)),   # wo per head
        pl.BlockSpec((1, F_pad), lambda b, qi: (0, 0)),                # bo
    ]
    args = [q_p, kt_p, v_p, mask_p, wq_all, bq_all, wo_h, bo_p]

    grid_spec = pltpu.PrefetchScalarGridSpec(
        num_scalar_prefetch=0,
        grid=(B, T1_pad // tq),
        in_specs=in_specs,
        out_specs=pl.BlockSpec((1, tq, F_pad), lambda b, qi: (b, qi, 0)),
    )

    out_pad = pl.pallas_call(
        _mha_kernel,
        out_shape=jax.ShapeDtypeStruct((B, T1_pad, F_pad), out_dtype),
        grid_spec=grid_spec,
        compiler_params=pltpu.CompilerParams(
            dimension_semantics=("parallel", "parallel"),
            vmem_limit_bytes=vmem_limit_bytes),
    )(*args)

    return out_pad[:, :T1, :F]


def multi_headed_attention_ref(query, key, value, mask, params, n_head):
    """Pure-JAX f32 reference mirroring the PyTorch module exactly."""
    B, T1, F = query.shape
    d_k = F // n_head
    wq, bq, wkv, bkv, wo, bo = params
    q = query @ wq.T + bq
    k = key @ wkv.T + bkv
    v = value @ wkv.T + bkv
    q = q.reshape(B, T1, n_head, d_k).transpose(0, 2, 1, 3)
    k = k.reshape(B, -1, n_head, d_k).transpose(0, 2, 1, 3)
    v = v.reshape(B, -1, n_head, d_k).transpose(0, 2, 1, 3)
    scores = jnp.einsum("bhtd,bhsd->bhts", q, k) / math.sqrt(d_k)
    if mask is not None:
        mask_f = mask.astype(scores.dtype)[:, None]          # (B,1,1|T1,T2)
        scores = scores * mask_f + (mask_f - 1.0) * 1000.0
        probs = jax.nn.softmax(scores, axis=-1) * mask_f
    else:
        probs = jax.nn.softmax(scores, axis=-1)
    x = jnp.einsum("bhts,bhsd->bhtd", probs, v)
    x = x.transpose(0, 2, 1, 3).reshape(B, T1, F)
    return x @ wo.T + bo


if __name__ == "__main__":
    # Small, module-consistent shapes.
    B, T1, T2 = 2, 8, 8
    n_head, n_feat = 4, 32
    dropout_rate = 0.1  # inactive in eval mode

    key0 = jax.random.PRNGKey(0)
    keys = jax.random.split(key0, 10)

    query = jax.random.normal(keys[0], (B, T1, n_feat), dtype=jnp.float32)
    keyt = jax.random.normal(keys[1], (B, T2, n_feat), dtype=jnp.float32)
    value = jax.random.normal(keys[2], (B, T2, n_feat), dtype=jnp.float32)

    # Padding-style mask (B, 1, T2): batch 0 sees all frames, batch 1 sees 5.
    lengths = jnp.array([T2, 5])
    mask = (jnp.arange(T2)[None, :] < lengths[:, None]).astype(jnp.float32)[:, None, :]

    # Deterministic parameter init (nn.Linear shapes: W=(out,in), b=(out,)).
    s = 1.0 / math.sqrt(n_feat)
    wq = jax.random.uniform(keys[3], (n_feat, n_feat), minval=-s, maxval=s, dtype=jnp.float32)
    bq = jax.random.uniform(keys[4], (n_feat,), minval=-s, maxval=s, dtype=jnp.float32)
    wkv = jax.random.uniform(keys[5], (n_feat, n_feat), minval=-s, maxval=s, dtype=jnp.float32)
    bkv = jax.random.uniform(keys[6], (n_feat,), minval=-s, maxval=s, dtype=jnp.float32)
    wo = jax.random.uniform(keys[7], (n_feat, n_feat), minval=-s, maxval=s, dtype=jnp.float32)
    bo = jax.random.uniform(keys[8], (n_feat,), minval=-s, maxval=s, dtype=jnp.float32)
    params = (wq, bq, wkv, bkv, wo, bo)

    # Cross-attention path (distinct key / value arrays).
    out = multi_headed_attention(query, keyt, value, mask, params, n_head)
    out = jax.block_until_ready(out)
    ref = multi_headed_attention_ref(query, keyt, value, mask, params, n_head)
    assert out.shape == (B, T1, n_feat)
    # bf16 MXU operands -> loosened tolerance vs the f32 reference.
    assert jnp.allclose(out, ref, atol=5e-2, rtol=5e-2), "cross-attn mismatch vs reference"

    # Self-attention fast path (key is value -> single shared kv projection).
    out_sa = multi_headed_attention(query, keyt, keyt, mask, params, n_head)
    out_sa = jax.block_until_ready(out_sa)
    ref_sa = multi_headed_attention_ref(query, keyt, keyt, mask, params, n_head)
    assert jnp.allclose(out_sa, ref_sa, atol=5e-2, rtol=5e-2), "self-attn mismatch vs reference"

    print("KERNEL_OK")
</pallas_src>

<mosaic_0001>
module attributes {stable_mosaic.version = 11 : i64} {
  func.func @_mha_kernel(%arg0: i32, %arg1: i32, %arg2: memref<1x8x128xbf16, #tpu.memory_space<vmem>>, %arg3: memref<4x8x128xbf16, #tpu.memory_space<vmem>>, %arg4: memref<4x128x8xbf16, #tpu.memory_space<vmem>>, %arg5: memref<1x1x128xbf16, #tpu.memory_space<vmem>>, %arg6: memref<128x128xbf16, #tpu.memory_space<vmem>>, %arg7: memref<1x128xf32, #tpu.memory_space<vmem>>, %arg8: memref<4x8x128xbf16, #tpu.memory_space<vmem>>, %arg9: memref<1x128xf32, #tpu.memory_space<vmem>>, %arg10: memref<1x8x128xf32, #tpu.memory_space<vmem>>) attributes {dimension_semantics = [#tpu.dimension_semantics<parallel>, #tpu.dimension_semantics<parallel>], iteration_bounds = array<i64: 2, 1>, scalar_prefetch = 0 : i64, scratch_operands = 0 : i64, tpu.core_type = #tpu.core_type<tc>, window_params = [{transform_indices = @transform_0, window_bounds = array<i64: 1, 8, 128>}, {transform_indices = @transform_1, window_bounds = array<i64: 4, 8, 128>}, {transform_indices = @transform_2, window_bounds = array<i64: 4, 128, 8>}, {transform_indices = @transform_3, window_bounds = array<i64: 1, 1, 128>}, {pipeline_mode = #tpu.pipeline_mode<synchronous>, transform_indices = @transform_4, window_bounds = array<i64: 128, 128>}, {pipeline_mode = #tpu.pipeline_mode<synchronous>, transform_indices = @transform_5, window_bounds = array<i64: 1, 128>}, {pipeline_mode = #tpu.pipeline_mode<synchronous>, transform_indices = @transform_6, window_bounds = array<i64: 4, 8, 128>}, {pipeline_mode = #tpu.pipeline_mode<synchronous>, transform_indices = @transform_7, window_bounds = array<i64: 1, 128>}, {transform_indices = @transform_8, window_bounds = array<i64: 1, 8, 128>}]} {
    %c0 = arith.constant 0 : index
    %c0_0 = arith.constant 0 : index
    %c0_1 = arith.constant 0 : index
    %0 = vector.load %arg2[%c0, %c0_0, %c0_1] : memref<1x8x128xbf16, #tpu.memory_space<vmem>>, vector<1x8x128xbf16>
    %1 = vector.shape_cast %0 : vector<1x8x128xbf16> to vector<8x128xbf16>
    %c0_2 = arith.constant 0 : index
    %c0_3 = arith.constant 0 : index
    %c0_4 = arith.constant 0 : index
    %2 = vector.load %arg5[%c0_2, %c0_3, %c0_4] : memref<1x1x128xbf16, #tpu.memory_space<vmem>>, vector<1x1x128xbf16>
    %3 = vector.shape_cast %2 : vector<1x1x128xbf16> to vector<1x128xbf16>
    %4 = arith.extf %3 : vector<1x128xbf16> to vector<1x128xf32>
    %cst = arith.constant 1.000000e+00 : f32
    %5 = vector.broadcast %cst : f32 to vector<1x128xf32>
    %6 = arith.subf %4, %5 : vector<1x128xf32>
    %cst_5 = arith.constant 1.000000e+03 : f32
    %7 = vector.broadcast %cst_5 : f32 to vector<1x128xf32>
    %8 = arith.mulf %6, %7 : vector<1x128xf32>
    %c0_6 = arith.constant 0 : index
    %c0_7 = arith.constant 0 : index
    %9 = vector.load %arg6[%c0_6, %c0_7] : memref<128x128xbf16, #tpu.memory_space<vmem>>, vector<128x128xbf16>
    %cst_8 = arith.constant dense<0.000000e+00> : vector<8x128xf32>
    %10 = tpu.matmul %1, %9, %cst_8 {dimension_numbers = #tpu.dot_dimension_numbers<[1], [0], [0], [1], [0, 0, 1, 1], [], []>} : vector<8x128xbf16>, vector<128x128xbf16>, vector<8x128xf32> -> vector<8x128xf32>
    %c0_9 = arith.constant 0 : index
    %c0_10 = arith.constant 0 : index
    %11 = vector.load %arg7[%c0_9, %c0_10] : memref<1x128xf32, #tpu.memory_space<vmem>>, vector<1x128xf32>
    %12 = vector.broadcast %11 : vector<1x128xf32> to vector<8x128xf32>
    %13 = arith.addf %10, %12 : vector<8x128xf32>
    %14 = arith.truncf %13 : vector<8x128xf32> to vector<8x128xbf16>
    %15 = vector.extract_strided_slice %14 {offsets = [0, 0], sizes = [8, 8], strides = [1, 1]} : vector<8x128xbf16> to vector<8x8xbf16>
    %c0_11 = arith.constant 0 : index
    %c0_12 = arith.constant 0 : index
    %c0_13 = arith.constant 0 : index
    %16 = vector.load %arg3[%c0_11, %c0_12, %c0_13] : memref<4x8x128xbf16, #tpu.memory_space<vmem>>, vector<1x8x128xbf16>
    %17 = vector.shape_cast %16 : vector<1x8x128xbf16> to vector<8x128xbf16>
    %cst_14 = arith.constant dense<0.000000e+00> : vector<8x128xf32>
    %18 = tpu.matmul %15, %17, %cst_14 {dimension_numbers = #tpu.dot_dimension_numbers<[1], [0], [0], [1], [0, 0, 1, 1], [], []>} : vector<8x8xbf16>, vector<8x128xbf16>, vector<8x128xf32> -> vector<8x128xf32>
    %19 = vector.broadcast %4 : vector<1x128xf32> to vector<8x128xf32>
    %20 = arith.mulf %18, %19 : vector<8x128xf32>
    %21 = vector.broadcast %8 : vector<1x128xf32> to vector<8x128xf32>
    %22 = arith.addf %20, %21 : vector<8x128xf32>
    %cst_15 = arith.constant dense<0xFF800000> : vector<8xf32>
    %23 = vector.multi_reduction <maximumf>, %22, %cst_15 [1] : vector<8x128xf32> to vector<8xf32>
    %24 = vector.shape_cast %23 : vector<8xf32> to vector<8x1xf32>
    %25 = vector.broadcast %24 : vector<8x1xf32> to vector<8x128xf32>
    %26 = arith.subf %22, %25 : vector<8x128xf32>
    %27 = math.exp %26 : vector<8x128xf32>
    %cst_16 = arith.constant dense<0.000000e+00> : vector<8xf32>
    %28 = vector.multi_reduction <add>, %27, %cst_16 [1] : vector<8x128xf32> to vector<8xf32>
    %29 = vector.shape_cast %28 : vector<8xf32> to vector<8x1xf32>
    %30 = tpu.reciprocal %29 {approx = true} : vector<8x1xf32> -> vector<8x1xf32>
    %31 = vector.broadcast %30 : vector<8x1xf32> to vector<8x128xf32>
    %32 = arith.mulf %27, %31 : vector<8x128xf32>
    %33 = vector.broadcast %4 : vector<1x128xf32> to vector<8x128xf32>
    %34 = arith.mulf %32, %33 : vector<8x128xf32>
    %35 = arith.truncf %34 : vector<8x128xf32> to vector<8x128xbf16>
    %c0_17 = arith.constant 0 : index
    %c0_18 = arith.constant 0 : index
    %c0_19 = arith.constant 0 : index
    %36 = vector.load %arg4[%c0_17, %c0_18, %c0_19] : memref<4x128x8xbf16, #tpu.memory_space<vmem>>, vector<1x128x8xbf16>
    %37 = vector.shape_cast %36 : vector<1x128x8xbf16> to vector<128x8xbf16>
    %cst_20 = arith.constant dense<0.000000e+00> : vector<8x8xf32>
    %38 = tpu.matmul %35, %37, %cst_20 {dimension_numbers = #tpu.dot_dimension_numbers<[1], [0], [0], [1], [0, 0, 1, 1], [], []>} : vector<8x128xbf16>, vector<128x8xbf16>, vector<8x8xf32> -> vector<8x8xf32>
    %39 = arith.truncf %38 : vector<8x8xf32> to vector<8x8xbf16>
    %c0_21 = arith.constant 0 : index
    %c0_22 = arith.constant 0 : index
    %c0_23 = arith.constant 0 : index
    %40 = vector.load %arg8[%c0_21, %c0_22, %c0_23] : memref<4x8x128xbf16, #tpu.memory_space<vmem>>, vector<1x8x128xbf16>
    %41 = vector.shape_cast %40 : vector<1x8x128xbf16> to vector<8x128xbf16>
    %cst_24 = arith.constant dense<0.000000e+00> : vector<8x128xf32>
    %42 = tpu.matmul %39, %41, %cst_24 {dimension_numbers = #tpu.dot_dimension_numbers<[1], [0], [0], [1], [0, 0, 1, 1], [], []>} : vector<8x8xbf16>, vector<8x128xbf16>, vector<8x128xf32> -> vector<8x128xf32>
    %43 = vector.extract_strided_slice %14 {offsets = [0, 8], sizes = [8, 8], strides = [1, 1]} : vector<8x128xbf16> to vector<8x8xbf16>
    %c1 = arith.constant 1 : index
    %c0_25 = arith.constant 0 : index
    %c0_26 = arith.constant 0 : index
    %44 = vector.load %arg3[%c1, %c0_25, %c0_26] : memref<4x8x128xbf16, #tpu.memory_space<vmem>>, vector<1x8x128xbf16>
    %45 = vector.shape_cast %44 : vector<1x8x128xbf16> to vector<8x128xbf16>
    %cst_27 = arith.constant dense<0.000000e+00> : vector<8x128xf32>
    %46 = tpu.matmul %43, %45, %cst_27 {dimension_numbers = #tpu.dot_dimension_numbers<[1], [0], [0], [1], [0, 0, 1, 1], [], []>} : vector<8x8xbf16>, vector<8x128xbf16>, vector<8x128xf32> -> vector<8x128xf32>
    %47 = vector.broadcast %4 : vector<1x128xf32> to vector<8x128xf32>
    %48 = arith.mulf %46, %47 : vector<8x128xf32>
    %49 = vector.broadcast %8 : vector<1x128xf32> to vector<8x128xf32>
    %50 = arith.addf %48, %49 : vector<8x128xf32>
    %cst_28 = arith.constant dense<0xFF800000> : vector<8xf32>
    %51 = vector.multi_reduction <maximumf>, %50, %cst_28 [1] : vector<8x128xf32> to vector<8xf32>
    %52 = vector.shape_cast %51 : vector<8xf32> to vector<8x1xf32>
    %53 = vector.broadcast %52 : vector<8x1xf32> to vector<8x128xf32>
    %54 = arith.subf %50, %53 : vector<8x128xf32>
    %55 = math.exp %54 : vector<8x128xf32>
    %cst_29 = arith.constant dense<0.000000e+00> : vector<8xf32>
    %56 = vector.multi_reduction <add>, %55, %cst_29 [1] : vector<8x128xf32> to vector<8xf32>
    %57 = vector.shape_cast %56 : vector<8xf32> to vector<8x1xf32>
    %58 = tpu.reciprocal %57 {approx = true} : vector<8x1xf32> -> vector<8x1xf32>
    %59 = vector.broadcast %58 : vector<8x1xf32> to vector<8x128xf32>
    %60 = arith.mulf %55, %59 : vector<8x128xf32>
    %61 = vector.broadcast %4 : vector<1x128xf32> to vector<8x128xf32>
    %62 = arith.mulf %60, %61 : vector<8x128xf32>
    %63 = arith.truncf %62 : vector<8x128xf32> to vector<8x128xbf16>
    %c1_30 = arith.constant 1 : index
    %c0_31 = arith.constant 0 : index
    %c0_32 = arith.constant 0 : index
    %64 = vector.load %arg4[%c1_30, %c0_31, %c0_32] : memref<4x128x8xbf16, #tpu.memory_space<vmem>>, vector<1x128x8xbf16>
    %65 = vector.shape_cast %64 : vector<1x128x8xbf16> to vector<128x8xbf16>
    %cst_33 = arith.constant dense<0.000000e+00> : vector<8x8xf32>
    %66 = tpu.matmul %63, %65, %cst_33 {dimension_numbers = #tpu.dot_dimension_numbers<[1], [0], [0], [1], [0, 0, 1, 1], [], []>} : vector<8x128xbf16>, vector<128x8xbf16>, vector<8x8xf32> -> vector<8x8xf32>
    %67 = arith.truncf %66 : vector<8x8xf32> to vector<8x8xbf16>
    %c1_34 = arith.constant 1 : index
    %c0_35 = arith.constant 0 : index
    %c0_36 = arith.constant 0 : index
    %68 = vector.load %arg8[%c1_34, %c0_35, %c0_36] : memref<4x8x128xbf16, #tpu.memory_space<vmem>>, vector<1x8x128xbf16>
    %69 = vector.shape_cast %68 : vector<1x8x128xbf16> to vector<8x128xbf16>
    %cst_37 = arith.constant dense<0.000000e+00> : vector<8x128xf32>
    %70 = tpu.matmul %67, %69, %cst_37 {dimension_numbers = #tpu.dot_dimension_numbers<[1], [0], [0], [1], [0, 0, 1, 1], [], []>} : vector<8x8xbf16>, vector<8x128xbf16>, vector<8x128xf32> -> vector<8x128xf32>
    %71 = arith.addf %42, %70 : vector<8x128xf32>
    %72 = vector.extract_strided_slice %14 {offsets = [0, 16], sizes = [8, 8], strides = [1, 1]} : vector<8x128xbf16> to vector<8x8xbf16>
    %c2 = arith.constant 2 : index
    %c0_38 = arith.constant 0 : index
    %c0_39 = arith.constant 0 : index
    %73 = vector.load %arg3[%c2, %c0_38, %c0_39] : memref<4x8x128xbf16, #tpu.memory_space<vmem>>, vector<1x8x128xbf16>
    %74 = vector.shape_cast %73 : vector<1x8x128xbf16> to vector<8x128xbf16>
    %cst_40 = arith.constant dense<0.000000e+00> : vector<8x128xf32>
    %75 = tpu.matmul %72, %74, %cst_40 {dimension_numbers = #tpu.dot_dimension_numbers<[1], [0], [0], [1], [0, 0, 1, 1], [], []>} : vector<8x8xbf16>, vector<8x128xbf16>, vector<8x128xf32> -> vector<8x128xf32>
    %76 = vector.broadcast %4 : vector<1x128xf32> to vector<8x128xf32>
    %77 = arith.mulf %75, %76 : vector<8x128xf32>
    %78 = vector.broadcast %8 : vector<1x128xf32> to vector<8x128xf32>
    %79 = arith.addf %77, %78 : vector<8x128xf32>
    %cst_41 = arith.constant dense<0xFF800000> : vector<8xf32>
    %80 = vector.multi_reduction <maximumf>, %79, %cst_41 [1] : vector<8x128xf32> to vector<8xf32>
    %81 = vector.shape_cast %80 : vector<8xf32> to vector<8x1xf32>
    %82 = vector.broadcast %81 : vector<8x1xf32> to vector<8x128xf32>
    %83 = arith.subf %79, %82 : vector<8x128xf32>
    %84 = math.exp %83 : vector<8x128xf32>
    %cst_42 = arith.constant dense<0.000000e+00> : vector<8xf32>
    %85 = vector.multi_reduction <add>, %84, %cst_42 [1] : vector<8x128xf32> to vector<8xf32>
    %86 = vector.shape_cast %85 : vector<8xf32> to vector<8x1xf32>
    %87 = tpu.reciprocal %86 {approx = true} : vector<8x1xf32> -> vector<8x1xf32>
    %88 = vector.broadcast %87 : vector<8x1xf32> to vector<8x128xf32>
    %89 = arith.mulf %84, %88 : vector<8x128xf32>
    %90 = vector.broadcast %4 : vector<1x128xf32> to vector<8x128xf32>
    %91 = arith.mulf %89, %90 : vector<8x128xf32>
    %92 = arith.truncf %91 : vector<8x128xf32> to vector<8x128xbf16>
    %c2_43 = arith.constant 2 : index
    %c0_44 = arith.constant 0 : index
    %c0_45 = arith.constant 0 : index
    %93 = vector.load %arg4[%c2_43, %c0_44, %c0_45] : memref<4x128x8xbf16, #tpu.memory_space<vmem>>, vector<1x128x8xbf16>
    %94 = vector.shape_cast %93 : vector<1x128x8xbf16> to vector<128x8xbf16>
    %cst_46 = arith.constant dense<0.000000e+00> : vector<8x8xf32>
    %95 = tpu.matmul %92, %94, %cst_46 {dimension_numbers = #tpu.dot_dimension_numbers<[1], [0], [0], [1], [0, 0, 1, 1], [], []>} : vector<8x128xbf16>, vector<128x8xbf16>, vector<8x8xf32> -> vector<8x8xf32>
    %96 = arith.truncf %95 : vector<8x8xf32> to vector<8x8xbf16>
    %c2_47 = arith.constant 2 : index
    %c0_48 = arith.constant 0 : index
    %c0_49 = arith.constant 0 : index
    %97 = vector.load %arg8[%c2_47, %c0_48, %c0_49] : memref<4x8x128xbf16, #tpu.memory_space<vmem>>, vector<1x8x128xbf16>
    %98 = vector.shape_cast %97 : vector<1x8x128xbf16> to vector<8x128xbf16>
    %cst_50 = arith.constant dense<0.000000e+00> : vector<8x128xf32>
    %99 = tpu.matmul %96, %98, %cst_50 {dimension_numbers = #tpu.dot_dimension_numbers<[1], [0], [0], [1], [0, 0, 1, 1], [], []>} : vector<8x8xbf16>, vector<8x128xbf16>, vector<8x128xf32> -> vector<8x128xf32>
    %100 = arith.addf %71, %99 : vector<8x128xf32>
    %101 = vector.extract_strided_slice %14 {offsets = [0, 24], sizes = [8, 8], strides = [1, 1]} : vector<8x128xbf16> to vector<8x8xbf16>
    %c3 = arith.constant 3 : index
    %c0_51 = arith.constant 0 : index
    %c0_52 = arith.constant 0 : index
    %102 = vector.load %arg3[%c3, %c0_51, %c0_52] : memref<4x8x128xbf16, #tpu.memory_space<vmem>>, vector<1x8x128xbf16>
    %103 = vector.shape_cast %102 : vector<1x8x128xbf16> to vector<8x128xbf16>
    %cst_53 = arith.constant dense<0.000000e+00> : vector<8x128xf32>
    %104 = tpu.matmul %101, %103, %cst_53 {dimension_numbers = #tpu.dot_dimension_numbers<[1], [0], [0], [1], [0, 0, 1, 1], [], []>} : vector<8x8xbf16>, vector<8x128xbf16>, vector<8x128xf32> -> vector<8x128xf32>
    %105 = vector.broadcast %4 : vector<1x128xf32> to vector<8x128xf32>
    %106 = arith.mulf %104, %105 : vector<8x128xf32>
    %107 = vector.broadcast %8 : vector<1x128xf32> to vector<8x128xf32>
    %108 = arith.addf %106, %107 : vector<8x128xf32>
    %cst_54 = arith.constant dense<0xFF800000> : vector<8xf32>
    %109 = vector.multi_reduction <maximumf>, %108, %cst_54 [1] : vector<8x128xf32> to vector<8xf32>
    %110 = vector.shape_cast %109 : vector<8xf32> to vector<8x1xf32>
    %111 = vector.broadcast %110 : vector<8x1xf32> to vector<8x128xf32>
    %112 = arith.subf %108, %111 : vector<8x128xf32>
    %113 = math.exp %112 : vector<8x128xf32>
    %cst_55 = arith.constant dense<0.000000e+00> : vector<8xf32>
    %114 = vector.multi_reduction <add>, %113, %cst_55 [1] : vector<8x128xf32> to vector<8xf32>
    %115 = vector.shape_cast %114 : vector<8xf32> to vector<8x1xf32>
    %116 = tpu.reciprocal %115 {approx = true} : vector<8x1xf32> -> vector<8x1xf32>
    %117 = vector.broadcast %116 : vector<8x1xf32> to vector<8x128xf32>
    %118 = arith.mulf %113, %117 : vector<8x128xf32>
    %119 = vector.broadcast %4 : vector<1x128xf32> to vector<8x128xf32>
    %120 = arith.mulf %118, %119 : vector<8x128xf32>
    %121 = arith.truncf %120 : vector<8x128xf32> to vector<8x128xbf16>
    %c3_56 = arith.constant 3 : index
    %c0_57 = arith.constant 0 : index
    %c0_58 = arith.constant 0 : index
    %122 = vector.load %arg4[%c3_56, %c0_57, %c0_58] : memref<4x128x8xbf16, #tpu.memory_space<vmem>>, vector<1x128x8xbf16>
    %123 = vector.shape_cast %122 : vector<1x128x8xbf16> to vector<128x8xbf16>
    %cst_59 = arith.constant dense<0.000000e+00> : vector<8x8xf32>
    %124 = tpu.matmul %121, %123, %cst_59 {dimension_numbers = #tpu.dot_dimension_numbers<[1], [0], [0], [1], [0, 0, 1, 1], [], []>} : vector<8x128xbf16>, vector<128x8xbf16>, vector<8x8xf32> -> vector<8x8xf32>
    %125 = arith.truncf %124 : vector<8x8xf32> to vector<8x8xbf16>
    %c3_60 = arith.constant 3 : index
    %c0_61 = arith.constant 0 : index
    %c0_62 = arith.constant 0 : index
    %126 = vector.load %arg8[%c3_60, %c0_61, %c0_62] : memref<4x8x128xbf16, #tpu.memory_space<vmem>>, vector<1x8x128xbf16>
    %127 = vector.shape_cast %126 : vector<1x8x128xbf16> to vector<8x128xbf16>
    %cst_63 = arith.constant dense<0.000000e+00> : vector<8x128xf32>
    %128 = tpu.matmul %125, %127, %cst_63 {dimension_numbers = #tpu.dot_dimension_numbers<[1], [0], [0], [1], [0, 0, 1, 1], [], []>} : vector<8x8xbf16>, vector<8x128xbf16>, vector<8x128xf32> -> vector<8x128xf32>
    %129 = arith.addf %100, %128 : vector<8x128xf32>
    %c0_64 = arith.constant 0 : index
    %c0_65 = arith.constant 0 : index
    %130 = vector.load %arg9[%c0_64, %c0_65] : memref<1x128xf32, #tpu.memory_space<vmem>>, vector<1x128xf32>
    %131 = vector.broadcast %130 : vector<1x128xf32> to vector<8x128xf32>
    %132 = arith.addf %129, %131 : vector<8x128xf32>
    %c0_66 = arith.constant 0 : index
    %c0_67 = arith.constant 0 : index
    %c0_68 = arith.constant 0 : index
    %133 = vector.load %arg10[%c0_66, %c0_67, %c0_68] : memref<1x8x128xf32, #tpu.memory_space<vmem>>, vector<1x8x128xf32>
    %134 = vector.shape_cast %133 : vector<1x8x128xf32> to vector<8x128xf32>
    %135 = vector.shape_cast %132 : vector<8x128xf32> to vector<1x8x128xf32>
    tpu.vector_store %arg10[%c0_66, %c0_67, %c0_68], %135 {strides = array<i32>} : memref<1x8x128xf32, #tpu.memory_space<vmem>>, vector<1x8x128xf32>,
    return
  }
  func.func @transform_0(%arg0: i32, %arg1: i32) -> (i32, i32, i32) {
    %c0_i32 = arith.constant 0 : i32
    %c0_i32_0 = arith.constant 0 : i32
    return %arg0, %arg1, %c0_i32 : i32, i32, i32
  }
  func.func @transform_1(%arg0: i32, %arg1: i32) -> (i32, i32, i32) {
    %c0_i32 = arith.constant 0 : i32
    %c0_i32_0 = arith.constant 0 : i32
    %c0_i32_1 = arith.constant 0 : i32
    return %arg0, %c0_i32, %c0_i32_0 : i32, i32, i32
  }
  func.func @transform_2(%arg0: i32, %arg1: i32) -> (i32, i32, i32) {
    %c0_i32 = arith.constant 0 : i32
    %c0_i32_0 = arith.constant 0 : i32
    %c0_i32_1 = arith.constant 0 : i32
    return %arg0, %c0_i32, %c0_i32_0 : i32, i32, i32
  }
  func.func @transform_3(%arg0: i32, %arg1: i32) -> (i32, i32, i32) {
    %c0_i32 = arith.constant 0 : i32
    %c0_i32_0 = arith.constant 0 : i32
    %c0_i32_1 = arith.constant 0 : i32
    return %arg0, %c0_i32, %c0_i32_0 : i32, i32, i32
  }
  func.func @transform_4(%arg0: i32, %arg1: i32) -> (i32, i32) {
    %c0_i32 = arith.constant 0 : i32
    %c0_i32_0 = arith.constant 0 : i32
    %c0_i32_1 = arith.constant 0 : i32
    return %c0_i32, %c0_i32_0 : i32, i32
  }
  func.func @transform_5(%arg0: i32, %arg1: i32) -> (i32, i32) {
    %c0_i32 = arith.constant 0 : i32
    %c0_i32_0 = arith.constant 0 : i32
    %c0_i32_1 = arith.constant 0 : i32
    return %c0_i32, %c0_i32_0 : i32, i32
  }
  func.func @transform_6(%arg0: i32, %arg1: i32) -> (i32, i32, i32) {
    %c0_i32 = arith.constant 0 : i32
    %c0_i32_0 = arith.constant 0 : i32
    %c0_i32_1 = arith.constant 0 : i32
    %c0_i32_2 = arith.constant 0 : i32
    return %c0_i32, %c0_i32_0, %c0_i32_1 : i32, i32, i32
  }
  func.func @transform_7(%arg0: i32, %arg1: i32) -> (i32, i32) {
    %c0_i32 = arith.constant 0 : i32
    %c0_i32_0 = arith.constant 0 : i32
    %c0_i32_1 = arith.constant 0 : i32
    return %c0_i32, %c0_i32_0 : i32, i32
  }
  func.func @transform_8(%arg0: i32, %arg1: i32) -> (i32, i32, i32) {
    %c0_i32 = arith.constant 0 : i32
    %c0_i32_0 = arith.constant 0 : i32
    return %arg0, %arg1, %c0_i32 : i32, i32, i32
  }
}

</mosaic_0001>

<bundles_post_ra>
// kernel: tpu_custom_call.1
= control target key start
LH: loop header
LB: loop body
LE: loop exit
PB: predicated region body
PF: predicated region fallthrough
CT: control target
= control target key end

     0   :  { %13 = vsyncpa [#allocation3], 0  ;;  %s2413_s0 = inlined_call_operand.vmem [shape: bf16[2,8,128], index: 0, kind: input, shape index: {}]   ;;  %s2414_s1 = inlined_call_operand.vmem [shape: bf16[8,8,128], index: 1, kind: input, shape index: {}]   ;;  %s2415_s2 = inlined_call_operand.vmem [shape: bf16[8,128,8], index: 2, kind: input, shape index: {}]   ;;  %s2416_s3 = inlined_call_operand.vmem [shape: bf16[2,1,128], index: 3, kind: input, shape index: {}]   ;;  %s2417_s4 = inlined_call_operand.vmem [shape: bf16[128,128], index: 4, kind: input, shape index: {}]   ;;  %s2418_s5 = inlined_call_operand.vmem [shape: f32[1,128], index: 5, kind: input, shape index: {}]   ;;  %s2419_s6 = inlined_call_operand.vmem [shape: bf16[4,8,128], index: 6, kind: input, shape index: {}]   ;;  %s2420_s7 = inlined_call_operand.vmem [shape: f32[1,128], index: 7, kind: input, shape index: {}]   ;;  %s2421_s8 = inlined_call_operand.hbm [shape: f32[2,8,128], index: 8, kind: output, shape index: {}]  }
   0x1   :  { %15 = vsyncpa [#allocation3 + $0x1], 0  ;;  %s2087_s27 = smov 0   ;;  %s2089_s28 = smov 0  }
   0x2   :  { %s2091_s29 = smov 0   ;;  %s2093_s30 = smov 0  }
   0x3   :  { %s2095_s9 = smov 0   ;;  %s2097_s10 = smov 0  }
   0x4 LB: > { %s1509_s11 = sadd.s32 4294967295, %s2034_s10   ;;  %s1510_s12 = sadd.s32 4294967294, %s2034_s10   ;;  %s2034_s10 = sphi %s2097_s10, %s21_s10   ;;  %s2030_s9 = sphi %s2095_s9, %s2428_s9   ;;  %s2026_s30 = sphi %s2093_s30, %s2427_s30   ;;  %s2022_s29 = sphi %s2091_s29, %s2426_s29   ;;  %s2018_s28 = sphi %s2089_s28, %s2425_s28   ;;  %s2014_s27 = sphi %s2087_s27, %s2424_s27  }
   0x5   : > { %s33_s13 = sadd.s32 1, %s2030_s9  ;;  %s232_s14 = sadd.s32 1, %s2022_s29 }
   0x6   : > { %p35_p0 = scmp.ge.s32.totalorder %s33_s13, 2  ;;  %p242_p1 = scmp.ne.s32.totalorder %s2022_s29, %s2018_s28 }
   0x7   : > { %p243_p2 = scmp.eq.s32.totalorder %s1509_s11, 1  ;;  %p248_p3 = scmp.ne.s32.totalorder %s2018_s28, %s2014_s27 }
   0x8   : > { %s2430_s13 = smov (%p35_p0, %s33_s13), 0  ;;  %p249_p5 = scmp.eq.s32.totalorder %s1510_s12, 1 }
   0x9   : > { %p2127_p4 = por %p243_p2, %p242_p1  ;;  %s227_s16 = ssub.s32 %s2030_s9, %s2430_s13 }
   0xa   : > { %p1513_p6 = scmp.ge.s32.totalorder %s2034_s10, 1  ;;  %p230_p7 = scmp.eq.s32.totalorder %s227_s16, 0 }
   0xb   : > { %p2134_p8 = por %p249_p5, %p248_p3  ;;  %p314_p9 = scmp.lt.s32.totalorder %s2034_s10, 3 }
   0xc   : > { %s2140_s18 = scalar_select %p230_p7, %s2022_s29, %s232_s14  }
   0xd   : > { %p315_p10 = pnand %p1513_p6, %p314_p9 }
   0xe   : > { %v1900_v0 = vld [vmem:[%s2417_s4] sm:$0xff] (!%p315_p10)   ;;  %v2036_v1 = vmov (!%p315_p10), 0.0   ;;  %v1901_v2 = vld [vmem:[%s2417_s4 + $0x8] sm:$0xff] (!%p315_p10)   ;;  %vm2037_vm0 = vmmov (!%p315_p10), 0   ;;  %v1902_v3 = vld [vmem:[%s2417_s4 + $0x10] sm:$0xff] (!%p315_p10)   ;;  %p364_p11 = scmp.lt.s32.totalorder (!%p315_p10), %s2026_s30, 1  ;;  %v554_v23 = vlaneseq (!%p315_p10) }
   0xf   : > { %318 = sbr.rel (%p315_p10) target bundleno = 2870 (0xb36), region = 52  ;;  %1692 = vmatprep.subr.bf16.mxu0 (!%p315_p10), %v2036_v1  ;;  %1718 = vmatprep.subr.bf16.mxu1 (!%p315_p10), %v2036_v1  ;;  %v1903_v4 = vld [vmem:[%s2417_s4 + $0x18] sm:$0xff] (!%p315_p10)   ;;  %v1904_v5 = vld [vmem:[%s2417_s4 + $0x20] sm:$0xff] (!%p315_p10)   ;;  %v1905_v6 = vld [vmem:[%s2417_s4 + $0x28] sm:$0xff] (!%p315_p10)   ;;  %s1516_s12 = sshll.u32 (!%p315_p10), %s2026_s30, 2  ;;  %vm510_vm1 = vcmask (!%p315_p10), 1043456  }
  0x10   : > { %1693 = vmatpush3.bf16.msra.mxu0 (!%p315_p10), %v1900_v0  ;;  %1708 = vmatprep.mubr.msk.bf16.mxu0 (!%p315_p10), %vm2037_vm0, %v2036_v1  ;;  %v1906_v7 = vld [vmem:[%s2417_s4 + $0x30] sm:$0xff] (!%p315_p10)   ;;  %v1907_v8 = vld [vmem:[%s2417_s4 + $0x38] sm:$0xff] (!%p315_p10)   ;;  %p372_p12 = scmp.lt.s32.totalorder (!%p315_p10), %s1516_s12, 7  ;;  %v1522_v12 = vld [vmem:[%s2418_s5] ss:$0 sm:$0xff] (!%p315_p10)  ;;  %vm506_vm2 = vcmask (!%p315_p10), 64512  }
  0x11   : > { %1694 = vmatprep.subr.bf16.mxu0 (!%p315_p10), %v2036_v1  ;;  %1734 = vmatprep.mubr.msk.bf16.mxu1 (!%p315_p10), %vm2037_vm0, %v2036_v1  ;;  %v555_v25 = vshrl.u32 (!%p315_p10), %v554_v23, 7  ;;  %s1627_s23 = sshll.u32 (!%p315_p10), %s2026_s30, 7  ;;  %s2041_s16 = smov (!%p315_p10), [#allocation2]  }
  0x13   : > { %v556_v27 = vsub.s32 (!%p315_p10), 0, %v555_v25 }
  0x14   : > { %1695 = vmatpush3.bf16.msra.mxu0 (!%p315_p10), %v1901_v2 }
  0x15   : > { %1696 = vmatprep.subr.bf16.mxu0 (!%p315_p10), %v2036_v1 }
  0x16   : > { %s2173_s19 = scalar_select %p364_p11, %s2026_s30, 1 }
  0x17   : > { %s2432_s12 = smov (!%p372_p12, %s1516_s12), 7 }
  0x18   : > { %1697 = vmatpush3.bf16.msra.mxu0 %v1902_v3  ;;  %s1515_s22 = sshll.u32 %s2173_s19, 2  ;;  %s1517_s14 = sshll.u32 %s2432_s12, 2 }
  0x19   : > { %1698 = vmatprep.subr.bf16.mxu0 %v2036_v1  ;;  %s370_s11 = scalar_lea.vmem %s2413_s0, %s1515_s22  ;;  %s2194_s21 = scalar_lea.vmem %s2414_s1, %s1517_s14 }
  0x1a   : > { %v388_v9 = vld [vmem:[%s370_s11] sm:$0xf]  ;;  %s1630_s22 = sshll.u32 %s2432_s12, 6  ;;  %v1540_v14 = vld [vmem:[%s2194_s21 + $0x4] sm:$0xf]  ;;  %s2038_s12 = smov 120  }
  0x1b   : > { %v505_v10 = vld [vmem:[%s2194_s21] sm:$0xf]  ;;  %s2202_s25 = scalar_lea.vmem %s2415_s2, %s1630_s22  ;;  %v690_v20 = vsel %vm510_vm1, %v1540_v14, 0  ;;  %s386_s20 = scalar_lea.vmem %s2416_s3, %s2173_s19 }
  0x1c   : > { %1699 = vmatpush3.bf16.msra.mxu0 %v1903_v4  ;;  %v512_v11 = vsel %vm510_vm1, %v505_v10, 0  ;;  %v389_v22 = vld [vmem:[%s386_s20] sm:$0x1]  ;;  %v1909_v47 = vld [vmem:[%s2202_s25 + $0x8] sm:$0xff]   ;;  %v1910_v49 = vld [vmem:[%s2202_s25 + $0x10] sm:$0xff]   ;;  %s2039_s19 = smov 112   ;;  %s2366_s14 = scalar_lea.hbm %s2421_s8, %s1627_s23 }
  0x1d   : > { %1700 = vmatprep.subr.bf16.mxu0 %v2036_v1  ;;  %v390_v24 = vunpack.c.l.bf16 %v389_v22  ;;  %v1908_v46 = vld [vmem:[%s2202_s25] sm:$0xff]   ;;  %v1911_v50 = vld [vmem:[%s2202_s25 + $0x18] sm:$0xff]   ;;  %v1913_v52 = vld [vmem:[%s2202_s25 + $0x28] sm:$0xff]   ;;  %s2040_s11 = smov 104  }
  0x1e   : > { %1719 = vmatpush3.bf16.msra.mxu1 %v1908_v46  ;;  %v1912_v51 = vld [vmem:[%s2202_s25 + $0x20] sm:$0xff]   ;;  %v1914_v53 = vld [vmem:[%s2202_s25 + $0x30] sm:$0xff]   ;;  %v1915_v54 = vld [vmem:[%s2202_s25 + $0x38] sm:$0xff]  }
  0x1f   : > { %v1521_v26 = vadd.f32 -1.0, %v390_v24  ;;  %v2224_v29 = vrot.slane %v390_v24, %v556_v27  ;;  %1720 = vmatprep.subr.bf16.mxu1 %v2036_v1  ;;  %v1916_v63 = vld [vmem:[%s2202_s25 + $0x40] sm:$0xff]   ;;  %v1917_v2 = vld [vmem:[%s2202_s25 + $0x48] sm:$0xff]   ;;  %v1918_v3 = vld [vmem:[%s2202_s25 + $0x50] sm:$0xff]  }
  0x20   : > { %1701 = vmatpush3.bf16.msra.mxu0 %v1904_v5  ;;  %v1919_v4 = vld [vmem:[%s2202_s25 + $0x58] sm:$0xff]   ;;  %v1920_v5 = vld [vmem:[%s2202_s25 + $0x60] sm:$0xff]  }
  0x21   : > { %1702 = vmatprep.subr.bf16.mxu0 %v2036_v1  ;;  %v392_v28 = vmul.f32 1000.0, %v1521_v26 }
  0x22   : > { %1721 = vmatpush3.bf16.msra.mxu1 %v1909_v47 }
  0x23   : > { %v2226_v30 = vrot.slane %v392_v28, %v556_v27  ;;  %1722 = vmatprep.subr.bf16.mxu1 %v2036_v1  ;;  %v1569_v28 = vld [vmem:[%s2194_s21 + $0x8] sm:$0xf] }
  0x24   : > { %1703 = vmatpush3.bf16.msra.mxu0 %v1905_v6  ;;  %v1921_v6 = vld [vmem:[%s2202_s25 + $0x68] sm:$0xff]  }
  0x25   : > { %1704 = vmatprep.subr.bf16.mxu0 %v2036_v1 }
  0x26   : > { %1723 = vmatpush3.bf16.msra.mxu1 %v1910_v49  ;;  %v1924_v49 = vld [vmem:[%s2202_s25 + $0x80] sm:$0xff]  }
  0x27   : > { %1724 = vmatprep.subr.bf16.mxu1 %v2036_v1 }
  0x28   : > { %1705 = vmatpush3.bf16.msra.mxu0 %v1906_v7  ;;  %v1922_v7 = vld [vmem:[%s2202_s25 + $0x70] sm:$0xff]  }
  0x29   : > { %1706 = vmatprep.subr.bf16.mxu0 %v2036_v1 }
  0x2a   : > { %1725 = vmatpush3.bf16.msra.mxu1 %v1911_v50  ;;  %v1925_v50 = vld [vmem:[%s2202_s25 + $0x88] sm:$0xff]  }
  0x2b   : > { %1726 = vmatprep.subr.bf16.mxu1 %v2036_v1 }
  0x2c   : > { %1707 = vmatpush3.bf16.msra.mxu0 %v1907_v8  ;;  %v1923_v8 = vld [vmem:[%s2202_s25 + $0x78] sm:$0xff]  }
  0x2d   : > { %1712 = vmatprep.subr.bf16.mxu0 %v2036_v1 }
  0x2e   : > { %1727 = vmatpush3.bf16.msra.mxu1 %v1912_v51  ;;  %v1926_v51 = vld [vmem:[%s2202_s25 + $0x90] sm:$0xff]  }
  0x2f   : > { %1709 = vmatmul.mubr.bf16.vlgmr.msra.gmra.mrb[0].mxu0 %v388_v9  ;;  %1728 = vmatprep.subr.bf16.mxu1 %v2036_v1  ;;  %v1566_v9 = vld [vmem:[%s2419_s6 + $0x4] sm:$0xf] }
  0x30   : > { %1714 = vmatprep.mubr.msk.bf16.mxu0 %vm2037_vm0, %v2036_v1  ;;  %1713 = vmatpush3.bf16.msra.mxu0 %v512_v11  ;;  %v857_v10 = vsel %vm510_vm1, %v1566_v9, 0 }
  0x31   : > { %1738 = vmatprep.subr.bf16.mxu0 %v2036_v1 }
  0x32   : > { %1729 = vmatpush3.bf16.msra.mxu1 %v1913_v52  ;;  %v1927_v52 = vld [vmem:[%s2202_s25 + $0x98] sm:$0xff]  }
  0x33   : > { %1730 = vmatprep.subr.bf16.mxu1 %v2036_v1 }
  0x36   : > { %1731 = vmatpush3.bf16.msra.mxu1 %v1914_v53 }
  0x37   : > { %1732 = vmatprep.subr.bf16.mxu1 %v2036_v1 }
  0x3a   : > { %1733 = vmatpush3.bf16.msra.mxu1 %v1915_v54 }
  0x3b   : > { %1744 = vmatprep.subr.bf16.mxu1 %v2036_v1 }
 0x102   : > { %v498_v13 = vpop.f32.mrb[0].mxu0 }
 0x103   : > { %v499_v15 = vadd.f32 %v1522_v12, %v498_v13  ;;  %v1710_v16 = vpop.f32.mrb[1].mxu0 }
 0x104   : > { %v501_v17 = vpop.f32.mrb[2].mxu0 }
 0x105   : > { %v2208_v18 = vpack.c.bf16 %v499_v15, %v499_v15  ;;  %v1711_v19 = vpop.f32.mrb[3].mxu0 }
 0x107   : > { %684 = vrot.lane.b32.xlu0 %v2208_v18, %s2038_s12  ;;  %1715 = vmatmul.mubr.msk.bf16.vlgmr.msra.gmra.mrb[4].mxu0 %vm506_vm2, %v2208_v18 }
 0x108   : > { %1739 = vmatpush3.bf16.msra.mxu0 %v690_v20  ;;  %1740 = vmatprep.mubr.msk.bf16.mxu0 %vm2037_vm0, %v2036_v1 }
 0x109   : > { %1764 = vmatprep.subr.bf16.mxu0 %v2036_v1 }
 0x179   : > { %v685_v21 = vpop.permute.xlu0 %684 }
 0x17a   : > { %1741 = vmatmul.mubr.msk.bf16.vlgmr.msra.gmra.mrb[8].mxu0 %vm506_vm2, %v685_v21  ;;  %v680_v21 = vld [vmem:[%s2419_s6] sm:$0xf] }
 0x17b   : > { %1766 = vmatprep.mubr.msk.bf16.mxu0 %vm2037_vm0, %v2036_v1  ;;  %1765 = vmatpush3.bf16.msra.mxu0 %v857_v10  ;;  %v903_v25 = vsel %vm510_vm1, %v680_v21, 0 }
 0x17c   : > { %1770 = vmatprep.subr.bf16.mxu0 %v2036_v1 }
 0x1da   : > { %v548_v31 = vpop.f32.mrb[4].mxu0 }
 0x1db   : > { %v558_v32 = vmul.f32 %v2224_v29, %v548_v31  ;;  %v1716_v33 = vpop.f32.mrb[5].mxu0 }
 0x1dc   : > { %v551_v34 = vpop.f32.mrb[6].mxu0 }
 0x1dd   : > { %v1717_v35 = vpop.f32.mrb[7].mxu0  ;;  %v563_v36 = vadd.f32 %v2226_v30, %v558_v32  ;;  %v953_v32 = vsel %vm510_vm1, %v1569_v28, 0 }
 0x1df   : > { %564 = vmax.xlane.f32.xlu0 %v563_v36 }
 0x24d   : > { %v726_v37 = vpop.f32.mrb[8].mxu0 }
 0x24e   : > { %v732_v38 = vmul.f32 %v726_v37, %v2224_v29  ;;  %v1742_v39 = vpop.f32.mrb[9].mxu0 }
 0x24f   : > { %v729_v40 = vpop.f32.mrb[10].mxu0 }
 0x250   : > { %v1743_v41 = vpop.f32.mrb[11].mxu0  ;;  %v733_v42 = vadd.f32 %v732_v38, %v2226_v30 }
 0x252   : > { %734 = vmax.xlane.f32.xlu1 %v733_v42 }
 0x26c   : > { %v565_v43 = vpop.xlane.xlu0 %564 }
 0x26d   : > { %v566_v44 = vsub.f32 %v563_v36, %v565_v43 }
 0x26f   : > { %v567_v45 = vmul.f32 1.442695, %v566_v44 }
 0x271   : > { %1940 = vpow2.f32 %v567_v45 }
 0x27b   : > { %v1941_v48 = vpop.eup %1940 }
 0x27c   : > { %569 = vadd.xlane.f32.xlu1 %v1941_v48 }
 0x2df   : > { %v735_v55 = vpop.xlane.xlu1 %734 }
 0x2e0   : > { %v736_v56 = vsub.f32 %v733_v42, %v735_v55 }
 0x2e2   : > { %v737_v57 = vmul.f32 1.442695, %v736_v56 }
 0x2e4   : > { %1942 = vpow2.f32 %v737_v57  ;;  %v1928_v57 = vld [vmem:[%s2202_s25 + $0xa0] sm:$0xff]  }
 0x2ee   : > { %v1943_v58 = vpop.eup %1942 }
 0x2ef   : > { %739 = vadd.xlane.f32.xlu1 %v1943_v58 }
 0x300   : > { %947 = vrot.lane.b32.xlu1 %v2208_v18, %s2039_s19 }
 0x309   : > { %v570_v59 = vpop.xlane.xlu1 %569 }
 0x30a   : > { %1944 = vrcp.f32 %v570_v59  ;;  %v1930_v59 = vld [vmem:[%s2202_s25 + $0xb0] sm:$0xff]  }
 0x314   : > { %v1945_v60 = vpop.eup %1944 }
 0x315   : > { %v572_v61 = vmul.f32 %v1945_v60, %v1941_v48  ;;  %v1931_v60 = vld [vmem:[%s2202_s25 + $0xb8] sm:$0xff]  }
 0x317   : > { %v573_v62 = vmul.f32 %v572_v61, %v2224_v29  ;;  %v1595_v61 = vld [vmem:[%s2419_s6 + $0x8] sm:$0xf] }
 0x319   : > { %v574_v0 = vpack.c.bf16 %v573_v62, %v573_v62  ;;  %v1120_v62 = vsel %vm510_vm1, %v1595_v61, 0 }
 0x31b   : > { %1735 = vmatmul.mubr.bf16.vlgmr.msra.gmra.mrb[0].mxu1 %v574_v0 }
 0x31c   : > { %1745 = vmatpush3.bf16.msra.mxu1 %v1916_v63  ;;  %1760 = vmatprep.mubr.msk.bf16.mxu1 %vm2037_vm0, %v2036_v1 }
 0x31d   : > { %1746 = vmatprep.subr.bf16.mxu1 %v2036_v1 }
 0x320   : > { %1747 = vmatpush3.bf16.msra.mxu1 %v1917_v2 }
 0x321   : > { %1748 = vmatprep.subr.bf16.mxu1 %v2036_v1 }
 0x324   : > { %1749 = vmatpush3.bf16.msra.mxu1 %v1918_v3 }
 0x325   : > { %1750 = vmatprep.subr.bf16.mxu1 %v2036_v1 }
 0x328   : > { %1751 = vmatpush3.bf16.msra.mxu1 %v1919_v4  ;;  %v1597_v4 = vld [vmem:[%s2194_s21 + $0xc] sm:$0xf] }
 0x329   : > { %1752 = vmatprep.subr.bf16.mxu1 %v2036_v1 }
 0x32c   : > { %1753 = vmatpush3.bf16.msra.mxu1 %v1920_v5 }
 0x32d   : > { %1754 = vmatprep.subr.bf16.mxu1 %v2036_v1 }
 0x330   : > { %1755 = vmatpush3.bf16.msra.mxu1 %v1921_v6 }
 0x331   : > { %1756 = vmatprep.subr.bf16.mxu1 %v2036_v1 }
 0x334   : > { %1757 = vmatpush3.bf16.msra.mxu1 %v1922_v7 }
 0x335   : > { %1758 = vmatprep.subr.bf16.mxu1 %v2036_v1 }
 0x338   : > { %1759 = vmatpush3.bf16.msra.mxu1 %v1923_v8  ;;  %v1171_v8 = vsel %vm510_vm1, %v1597_v4, 0 }
 0x339   : > { %1802 = vmatprep.subr.bf16.mxu1 %v2036_v1 }
 0x37c   : > { %v740_v11 = vpop.xlane.xlu1 %739 }
 0x37d   : > { %1946 = vrcp.f32 %v740_v11 }
 0x380   : > { %v948_v33 = vpop.permute.xlu1 %947 }
 0x387   : > { %v1947_v12 = vpop.eup %1946 }
 0x388   : > { %v742_v13 = vmul.f32 %v1947_v12, %v1943_v58  ;;  %v1929_v58 = vld [vmem:[%s2202_s25 + $0xa8] sm:$0xff]  }
 0x38a   : > { %v743_v14 = vmul.f32 %v742_v13, %v2224_v29 }
 0x38c   : > { %v744_v15 = vpack.c.bf16 %v743_v14, %v743_v14 }
 0x38e   : > { %1761 = vmatmul.mubr.bf16.vlgmr.msra.gmra.mrb[4].mxu1 %v744_v15 }
 0x38f   : > { %1804 = vmatprep.mubr.msk.bf16.mxu1 %vm2037_vm0, %v2036_v1  ;;  %1803 = vmatpush3.bf16.msra.mxu1 %v1120_v62 }
 0x390   : > { %1808 = vmatprep.subr.bf16.mxu1 %v2036_v1 }
 0x3ee   : > { %v673_v16 = vpop.f32.mrb[0].mxu1 }
 0x3ef   : > { %v1736_v17 = vpop.f32.mrb[1].mxu1  ;;  %v679_v31 = vpack.c.bf16 %v673_v16, %v673_v16 }
 0x3f0   : > { %v676_v19 = vpop.f32.mrb[2].mxu1 }
 0x3f1   : > { %v1737_v20 = vpop.f32.mrb[3].mxu1 }
 0x461   : > { %v844_v22 = vpop.f32.mrb[4].mxu1 }
 0x462   : > { %v850_v23 = vpack.c.bf16 %v844_v22, %v844_v22  ;;  %v1762_v24 = vpop.f32.mrb[5].mxu1 }
 0x463   : > { %v847_v26 = vpop.f32.mrb[6].mxu1  ;;  %v1932_v24 = vld [vmem:[%s2202_s25 + $0xc0] sm:$0xff]  }
 0x464   : > { %v1763_v27 = vpop.f32.mrb[7].mxu1  ;;  %1767 = vmatmul.mubr.msk.bf16.vlgmr.msra.gmra.mrb[12].mxu0 %vm506_vm2, %v850_v23  ;;  %v1934_v26 = vld [vmem:[%s2202_s25 + $0xd0] sm:$0xff]  }
 0x465   : > { %1771 = vmatpush3.bf16.msra.mxu0 %v903_v25  ;;  %1772 = vmatprep.mubr.msk.bf16.mxu0 %vm2037_vm0, %v2036_v1  ;;  %v1933_v25 = vld [vmem:[%s2202_s25 + $0xc8] sm:$0xff]   ;;  %v1935_v27 = vld [vmem:[%s2202_s25 + $0xd8] sm:$0xff]  }
 0x466   : > { %1776 = vmatprep.subr.bf16.mxu0 %v2036_v1 }
 0x46c   : > { %1773 = vmatmul.mubr.msk.bf16.vlgmr.msra.gmra.mrb[16].mxu0 %vm506_vm2, %v679_v31 }
 0x46d   : > { %1777 = vmatpush3.bf16.msra.mxu0 %v953_v32  ;;  %1778 = vmatprep.mubr.msk.bf16.mxu0 %vm2037_vm0, %v2036_v1 }
 0x46e   : > { %1782 = vmatprep.subr.bf16.mxu0 %v2036_v1 }
 0x474   : > { %1779 = vmatmul.mubr.msk.bf16.vlgmr.msra.gmra.mrb[20].mxu0 %vm506_vm2, %v948_v33  ;;  %v1936_v33 = vld [vmem:[%s2202_s25 + $0xe0] sm:$0xff]  }
 0x475   : > { %1798 = vmatprep.mubr.msk.bf16.mxu0 %vm2037_vm0, %v2036_v1  ;;  %1783 = vmatpush3.bf16.msra.mxu0 %v1924_v49  ;;  %v1625_v49 = vld [vmem:[%s2420_s7] ss:$0 sm:$0xff] }
 0x476   : > { %1784 = vmatprep.subr.bf16.mxu0 %v2036_v1 }
 0x479   : > { %1785 = vmatpush3.bf16.msra.mxu0 %v1925_v50 }
 0x47a   : > { %1786 = vmatprep.subr.bf16.mxu0 %v2036_v1 }
 0x47d   : > { %1787 = vmatpush3.bf16.msra.mxu0 %v1926_v51 }
 0x47e   : > { %1788 = vmatprep.subr.bf16.mxu0 %v2036_v1 }
 0x481   : > { %1789 = vmatpush3.bf16.msra.mxu0 %v1927_v52 }
 0x482   : > { %1790 = vmatprep.subr.bf16.mxu0 %v2036_v1 }
 0x485   : > { %1791 = vmatpush3.bf16.msra.mxu0 %v1928_v57 }
 0x486   : > { %1792 = vmatprep.subr.bf16.mxu0 %v2036_v1 }
 0x489   : > { %1793 = vmatpush3.bf16.msra.mxu0 %v1929_v58 }
 0x48a   : > { %1794 = vmatprep.subr.bf16.mxu0 %v2036_v1 }
 0x48d   : > { %1795 = vmatpush3.bf16.msra.mxu0 %v1930_v59 }
 0x48e   : > { %1796 = vmatprep.subr.bf16.mxu0 %v2036_v1 }
 0x491   : > { %1797 = vmatpush3.bf16.msra.mxu0 %v1931_v60 }
 0x492   : > { %1834 = vmatprep.subr.bf16.mxu0 %v2036_v1 }
 0x537   : > { %v893_v34 = vpop.f32.mrb[12].mxu0 }
 0x538   : > { %v1768_v35 = vpop.f32.mrb[13].mxu0 }
 0x539   : > { %v896_v36 = vpop.f32.mrb[14].mxu0  ;;  %v1938_v35 = vld [vmem:[%s2202_s25 + $0xf0] sm:$0xff]  }
 0x53a   : > { %v1769_v37 = vpop.f32.mrb[15].mxu0  ;;  %v1939_v36 = vld [vmem:[%s2202_s25 + $0xf8] sm:$0xff]  }
 0x53b   : > { %v1623_v37 = vld [vmem:[%s2419_s6 + $0xc] sm:$0xf] }
 0x53f   : > { %v939_v38 = vpop.f32.mrb[16].mxu0 }
 0x540   : > { %v2293_v39 = vadd.f32 %v939_v38, %v893_v34  ;;  %v1774_v40 = vpop.f32.mrb[17].mxu0  ;;  %v1937_v34 = vld [vmem:[%s2202_s25 + $0xe8] sm:$0xff]   ;;  %v1338_v38 = vsel %vm510_vm1, %v1623_v37, 0  ;;  %s361_s25 = sand.u32 1, %s2018_s28  }
 0x541   : > { %v942_v41 = vpop.f32.mrb[18].mxu0  ;;  %s1514_s20 = sshll.u32 %s361_s25, 3  ;;  %s1391_s30 = scalar_lea.sflag [#allocation3], %s361_s25 }
 0x542   : > { %v1775_v42 = vpop.f32.mrb[19].mxu0  ;;  %s363_s24 = scalar_lea.vmem [#allocation2], %s1514_s20  ;;  %s1960_s20 = sshll.u32 %s2041_s16, 4  ;;  %s1961_s20 = int_to_ptr.vmem [resolvable:$false] %s1960_s20 }
 0x543   : > { %s1405_s26 = sshll.u32 %s363_s24, 4  ;;  %s1962_s19 = scalar_lea.vmem %s1961_s20, 256  ;;  %s2368_s26 = int_to_ptr.vmem [resolvable:$true] %s1405_s26 }
 0x544   : > { %s1956_s21 = scalar_lea.vmem %s2368_s26, 128  ;;  %p1963_p2 = scmp.lt.s32.totalorder %s2368_s26, %s1961_s20 }
 0x545   : > { %p1957_p13 = scmp.ne.s32.totalorder %s2368_s26, %s1956_s21  ;;  %p1964_p3 = scmp.lt.s32.totalorder %s1962_s19, %s1956_s21 }
 0x547   : > { %v989_v43 = vpop.f32.mrb[20].mxu0  ;;  %p1958_p0 = pnand %p1957_p13, %p2127_p4  ;;  %p1965_p5 = por %p1964_p3, %p1963_p2 }
 0x548   : > { %v995_v44 = vmul.f32 %v989_v43, %v2224_v29  ;;  %v1780_v45 = vpop.f32.mrb[21].mxu0 }
 0x549   : > { %v992_v46 = vpop.f32.mrb[22].mxu0  ;;  %p1959_p1 = pneg %p1958_p0 }
 0x54a   : > { %v1781_v47 = vpop.f32.mrb[23].mxu0  ;;  %v996_v48 = vadd.f32 %v995_v44, %v2226_v30 }
 0x54b   : > { %p1966_p6 = pnand %p1965_p5, %p1959_p1 }
 0x54c   : > { %997 = vmax.xlane.f32.xlu1 %v996_v48 }
 0x5d9   : > { %v998_v53 = vpop.xlane.xlu1 %997 }
 0x5da   : > { %v999_v54 = vsub.f32 %v996_v48, %v998_v53 }
 0x5dc   : > { %v1000_v55 = vmul.f32 1.442695, %v999_v54 }
 0x5de   : > { %1948 = vpow2.f32 %v1000_v55 }
 0x5e8   : > { %v1949_v56 = vpop.eup %1948 }
 0x5e9   : > { %1002 = vadd.xlane.f32.xlu0 %v1949_v56 }
 0x5ff   : > { %1165 = vrot.lane.b32.xlu0 %v2208_v18, %s2040_s11 }
 0x676   : > { %v1003_v63 = vpop.xlane.xlu0 %1002 }
 0x677   : > { %1950 = vrcp.f32 %v1003_v63 }
 0x67a   : > { %v1166_v11 = vpop.permute.xlu0 %1165 }
 0x681   : > { %v1951_v18 = vpop.eup %1950 }
 0x682   : > { %v1005_v0 = vmul.f32 %v1951_v18, %v1949_v56 }
 0x684   : > { %v1006_v2 = vmul.f32 %v1005_v0, %v2224_v29 }
 0x686   : > { %v1007_v3 = vpack.c.bf16 %v1006_v2, %v1006_v2 }
 0x688   : > { %1799 = vmatmul.mubr.bf16.vlgmr.msra.gmra.mrb[24].mxu0 %v1007_v3 }
 0x689   : > { %1836 = vmatprep.mubr.msk.bf16.mxu0 %vm2037_vm0, %v2036_v1  ;;  %1835 = vmatpush3.bf16.msra.mxu0 %v1338_v38 }
 0x75b   : > { %v1107_v5 = vpop.f32.mrb[24].mxu0 }
 0x75c   : > { %v1113_v6 = vpack.c.bf16 %v1107_v5, %v1107_v5  ;;  %v1800_v7 = vpop.f32.mrb[25].mxu0 }
 0x75d   : > { %v1110_v9 = vpop.f32.mrb[26].mxu0 }
 0x75e   : > { %v1801_v10 = vpop.f32.mrb[27].mxu0  ;;  %1805 = vmatmul.mubr.msk.bf16.vlgmr.msra.gmra.mrb[8].mxu1 %vm506_vm2, %v1113_v6 }
 0x75f   : > { %1809 = vmatpush3.bf16.msra.mxu1 %v1171_v8  ;;  %1810 = vmatprep.mubr.msk.bf16.mxu1 %vm2037_vm0, %v2036_v1 }
 0x760   : > { %1814 = vmatprep.subr.bf16.mxu1 %v2036_v1 }
 0x766   : > { %1811 = vmatmul.mubr.msk.bf16.vlgmr.msra.gmra.mrb[12].mxu1 %vm506_vm2, %v1166_v11 }
 0x767   : > { %1830 = vmatprep.mubr.msk.bf16.mxu1 %vm2037_vm0, %v2036_v1  ;;  %1815 = vmatpush3.bf16.msra.mxu1 %v1932_v24 }
 0x768   : > { %1816 = vmatprep.subr.bf16.mxu1 %v2036_v1 }
 0x76b   : > { %1817 = vmatpush3.bf16.msra.mxu1 %v1933_v25 }
 0x76c   : > { %1818 = vmatprep.subr.bf16.mxu1 %v2036_v1 }
 0x76f   : > { %1819 = vmatpush3.bf16.msra.mxu1 %v1934_v26 }
 0x770   : > { %1820 = vmatprep.subr.bf16.mxu1 %v2036_v1 }
 0x773   : > { %1821 = vmatpush3.bf16.msra.mxu1 %v1935_v27 }
 0x774   : > { %1822 = vmatprep.subr.bf16.mxu1 %v2036_v1 }
 0x777   : > { %1823 = vmatpush3.bf16.msra.mxu1 %v1936_v33 }
 0x778   : > { %1824 = vmatprep.subr.bf16.mxu1 %v2036_v1 }
 0x77b   : > { %1825 = vmatpush3.bf16.msra.mxu1 %v1937_v34 }
 0x77c   : > { %1826 = vmatprep.subr.bf16.mxu1 %v2036_v1 }
 0x77f   : > { %1827 = vmatpush3.bf16.msra.mxu1 %v1938_v35 }
 0x780   : > { %1828 = vmatprep.subr.bf16.mxu1 %v2036_v1 }
 0x783   : > { %1829 = vmatpush3.bf16.msra.mxu1 %v1939_v36 }
 0x831   : > { %v1156_v12 = vpop.f32.mrb[8].mxu1 }
 0x832   : > { %v2332_v13 = vadd.f32 %v1156_v12, %v2293_v39  ;;  %v1806_v14 = vpop.f32.mrb[9].mxu1 }
 0x833   : > { %v1159_v15 = vpop.f32.mrb[10].mxu1 }
 0x834   : > { %v1807_v16 = vpop.f32.mrb[11].mxu1 }
 0x839   : > { %v1207_v17 = vpop.f32.mrb[12].mxu1 }
 0x83a   : > { %v1213_v19 = vmul.f32 %v1207_v17, %v2224_v29  ;;  %v1812_v20 = vpop.f32.mrb[13].mxu1 }
 0x83b   : > { %v1210_v21 = vpop.f32.mrb[14].mxu1 }
 0x83c   : > { %v1813_v22 = vpop.f32.mrb[15].mxu1  ;;  %v1214_v23 = vadd.f32 %v1213_v19, %v2226_v30 }
 0x83e   : > { %1215 = vmax.xlane.f32.xlu0 %v1214_v23 }
 0x8cb   : > { %v1216_v30 = vpop.xlane.xlu0 %1215 }
 0x8cc   : > { %v1217_v28 = vsub.f32 %v1214_v23, %v1216_v30 }
 0x8ce   : > { %v1218_v31 = vmul.f32 1.442695, %v1217_v28 }
 0x8d0   : > { %1952 = vpow2.f32 %v1218_v31 }
 0x8da   : > { %v1953_v32 = vpop.eup %1952 }
 0x8db   : > { %1220 = vadd.xlane.f32.xlu1 %v1953_v32 }
 0x968   : > { %v1221_v39 = vpop.xlane.xlu1 %1220 }
 0x969   : > { %1954 = vrcp.f32 %v1221_v39 }
 0x973   : > { %v1955_v40 = vpop.eup %1954 }
 0x974   : > { %v1223_v41 = vmul.f32 %v1955_v40, %v1953_v32 }
 0x976   : > { %v1224_v42 = vmul.f32 %v1223_v41, %v2224_v29 }
 0x978   : > { %v1225_v43 = vpack.c.bf16 %v1224_v42, %v1224_v42 }
 0x97a   : > { %1831 = vmatmul.mubr.bf16.vlgmr.msra.gmra.mrb[16].mxu1 %v1225_v43 }
 0xa4d   : > { %v1325_v44 = vpop.f32.mrb[16].mxu1 }
 0xa4e   : > { %v1331_v1 = vpack.c.bf16 %v1325_v44, %v1325_v44  ;;  %v1832_v45 = vpop.f32.mrb[17].mxu1 }
 0xa4f   : > { %v1328_v46 = vpop.f32.mrb[18].mxu1 }
 0xa50   : > { %v1833_v47 = vpop.f32.mrb[19].mxu1  ;;  %1837 = vmatmul.mubr.msk.bf16.vlgmr.msra.gmra.mrb[28].mxu0 %vm506_vm2, %v1331_v1 }
 0xb23   : > { %v1374_v48 = vpop.f32.mrb[28].mxu0 }
 0xb24   : > { %v1380_v29 = vadd.f32 %v1374_v48, %v2332_v13  ;;  %v1838_v50 = vpop.f32.mrb[29].mxu0 }
 0xb25   : > { %v1377_v51 = vpop.f32.mrb[30].mxu0 }
 0xb26   : > { %v1388_v52 = vadd.f32 %v1625_v49, %v1380_v29  ;;  %v1839_v53 = vpop.f32.mrb[31].mxu0 }
 0xb28   : > { %1389 = vst [vmem:[%s363_s24] sm:$0xff] %v1388_v52 }
 0xb29   : > { %1969 = shalt.err (!%p1966_p6)
}
 0xb2a   : > { %s1970_s25 = scalar_lea.hbm %s2366_s14, 128  ;;  %s1974_s24 = scalar_lea.hbm %s2421_s8, 256 }
 0xb2b   : > { %p1971_p7 = scmp.ne.s32.totalorder %s2366_s14, %s1970_s25  ;;  %p1975_p11 = scmp.lt.u32.totalorder %s2366_s14, %s2421_s8 }
 0xb2c   : > { %p1976_p12 = scmp.lt.u32.totalorder %s1974_s24, %s1970_s25  ;;  %p1978_p0 = scmp.lt.u32.totalorder %s1970_s25, %s2366_s14 }
 0xb2d   : > { %p1972_p9 = pnand %p1971_p7, %p2127_p4 }
 0xb2e   : > { %p1977_p13 = por %p1976_p12, %p1975_p11 }
 0xb2f   : > { %p1973_p10 = pneg %p1972_p9 }
 0xb30   : > { %p1979_p1 = por %p1978_p0, %p1977_p13 }
 0xb32   : > { %p1980_p2 = pnand %p1979_p1, %p1973_p10 }
 0xb34   : > { %1983 = shalt.err (!%p1980_p2)
}
 0xb35   : > { %1840 = dma.vmem_to_hbm [thread:$0]  (%p2127_p4), %s2368_s26, 128, %s2366_s14, %s1391_s30  }
 0xb36 PF: > { %p1846_p3 = scmp.ge.s32.totalorder %s2034_s10, 2  ;;  %s1417_s21 = sand.u32 1, %s2014_s27  }
 0xb37   : > { %s1418_s16 = scalar_lea.sflag [#allocation3], %s1417_s21 }
 0xb38   : > { %p1843_p5 = pnand %p1846_p3, %p2134_p8 }
 0xb3a   : > { %2009 = dma.done.wait (!%p1843_p5), %s1418_s16, 128  }
 0xb3b   : > { %2011 = vsyncadd (!%p1843_p5), %s1418_s16, 4294967168  ;;  %s21_s10 = sadd.s32 1, %s2034_s10   ;;  %s2424_s27 = smov %s2018_s28 }
 0xb3c   : > { %p18_p6 = scmp.ge.s32.totalorder %s21_s10, 4   ;;  %s2425_s28 = smov %s2022_s29 }
 0xb3d   : > { %s2426_s29 = smov %s2140_s18  ;;  %s2427_s30 = smov %s2030_s9 }
 0xb3e   : > { %s2428_s9 = smov %s2430_s13  ;;  %20 = sbr.rel (!%p18_p6) target bundleno = 4 (0x4), region = 105 }
 0xb45   :  { %1423 = vsyncpa [#allocation3], 1 }
 0xb46   :  { %1425 = vsyncpa [#allocation3 + $0x1], 1 }

</bundles_post_ra>
